<compile_context>
chip_gen: v7x
topology: tpu7x:2x2x1
jax: 0.10.0
libtpu: 0.0.40
codegen_flags: <defaults>
</compile_context>

<pallas_src>
import functools

import jax
import jax.numpy as jnp
from jax import lax
from jax.experimental import pallas as pl
from jax.experimental.pallas import tpu as pltpu

# ----------------------------- model hyper-params ------------------------------
N_AGENTS = 4
STATE_DIM = 32
EMBED_DIM = 32
EPSILON = 0.1          # correction_epsilon
INIT_SCALE = 0.001     # correction_init_scale (xavier gain for correction layers)


# --------------------------------- kernel --------------------------------------
def _relaxed_qmix_kernel(s_ref, q_ref, ws_ref, wq_ref, b_ref, wc2_ref, hw_ref, hb_ref,
                         out_ref, *, n_agents, embed_dim, epsilon):
    """s_ref: (tb, S) states, q_ref: (tb, A) agent Qs (any float dtype, cast to bf16).
       ws_ref: (S, N) bf16 / wq_ref: (A, N) bf16 fused first-stage weights, b_ref: (1, N) f32.
       Column layout of N = 2*A*E + 5*E:
         [w1 | qs_rep | corr_fc1 | V0 | w_final | b1 | corr_fc2_state]
       wc2_ref: (E, E) f32 correction_fc2 x-part.
       hw_ref: (2, E) f32 rows = [V[2].w, correction_out.w]; hb_ref: (1, 2) f32 biases.
       out_ref: (tb, 2) = [q_tot, q_corr]."""
    f32 = jnp.float32
    A, E = n_agents, embed_dim
    AE = A * E

    s = s_ref[...].astype(jnp.bfloat16)                               # (tb, S)
    q = q_ref[...].astype(jnp.bfloat16)                               # (tb, A)

    # All state/qs-conditioned linear layers in two MXU calls (single K-tile each),
    # accumulated in f32.
    h = (jnp.dot(s, ws_ref[...], preferred_element_type=f32)
         + jnp.dot(q, wq_ref[...], preferred_element_type=f32)
         + b_ref[...])                                                # (tb, N) f32

    w1 = jnp.abs(h[:, 0:AE])                                          # |hyper_w_1(s)|   (tb, AE)
    qs_rep = h[:, AE:2 * AE]                                          # agent_qs repeat  (tb, AE)

    # Grouped activation over one contiguous 96-lane chunk (relu on corr_fc1 / V0,
    # abs on w_final), instead of three separate 32-lane slab ops.
    act_in = h[:, 2 * AE:2 * AE + 3 * E]                              # (tb, 3E)
    col = lax.broadcasted_iota(jnp.int32, (1, 3 * E), 1)
    act = jnp.maximum(act_in, jnp.where(col >= 2 * E, -act_in, 0.0))
    x1 = act[:, 0:E]                                                  # relu(corr_fc1([q,s]))
    v1 = act[:, E:2 * E]                                              # relu(V[0](s))
    wfin = act[:, 2 * E:3 * E]                                        # |hyper_w_final(s)|

    b1 = h[:, 2 * AE + 3 * E:2 * AE + 4 * E]                          # hyper_b_1(s)
    c2s = h[:, 2 * AE + 4 * E:2 * AE + 5 * E]                         # corr_fc2 state part (+bias)

    # --- main mixing: bmm(agent_qs[B,1,A], w1[B,A,E]) == sum_a qs_a * w1[:, a*E:(a+1)*E]
    p = qs_rep * w1                                                   # (tb, AE)
    if A & (A - 1) == 0:
        # power-of-two agents: XLU roll-reduction tree over the A groups of E lanes
        g = A
        while g > 1:
            half = g // 2
            p = p + pltpu.roll(p, shift=AE - half * E, axis=1)
            g = half
        mix = p[:, 0:E]
    else:
        mix = p[:, 0:E]
        for a in range(1, A):
            mix = mix + p[:, a * E:(a + 1) * E]

    hpre = mix + b1
    # ELU(alpha=1); clamp the exp argument so the masked branch never produces inf.
    hidden = jnp.where(hpre > 0, hpre, jnp.exp(jnp.minimum(hpre, 0.0)) - 1.0)

    hw = hw_ref[...]                                                  # (2, E) f32
    hb = hb_ref[...]                                                  # (1, 2) f32

    # V(s) second layer and the final mix as f32 VPU/XLU lane reductions (no N=1 matmuls).
    v = jnp.sum(v1 * hw[0:1, :], axis=-1, keepdims=True) + hb[:, 0:1]         # (tb, 1)
    y = jnp.sum(hidden * wfin, axis=-1, keepdims=True) + v                    # (tb, 1)

    # correction path: tiny (E,E) f32 matmul for the x-part, state part already in c2s.
    x2 = jnp.maximum(jnp.dot(x1, wc2_ref[...], preferred_element_type=f32) + c2s, 0.0)
    qc = jnp.sum(x2 * hw[1:2, :], axis=-1, keepdims=True) + hb[:, 1:2]        # (tb, 1)

    # Single full-block store (iota-select builds the (tb, 2) [q_tot | q_corr] block).
    lane = lax.broadcasted_iota(jnp.int32, (1, 2), 1)
    out_ref[...] = jnp.where(lane == 0, y + epsilon * qc, qc)


# ------------------------------ param packing -----------------------------------
def _pack_params(p, n_agents, state_dim, embed_dim):
    """Fuse all first-stage weights into state-row (S,N) and qs-row (A,N) blocks.

    Column order: [w1 | qs_rep | corr_fc1 | V0 | w_final | b1 | corr_fc2_state]
    (corr_fc1 and corr_fc2_state start on 128-lane-tile boundaries so the MXU-feeding
    slab and the slab added to the second matmul output need no relayout).
    NOTE (v5e): dropping the 128-column qs_rep block would save one 128-wide MXU column
    pass on v5e; on v6e/v7x (256-wide column tiles) it makes no difference, so the
    replication block is kept for a single shared implementation.
    """
    A, S, E = n_agents, state_dim, embed_dim
    AE = A * E
    zA = lambda n: jnp.zeros((A, n), jnp.float32)
    zS = lambda n: jnp.zeros((S, n), jnp.float32)
    # replication block: row a has ones on columns a*E:(a+1)*E -> (qs @ rep) = qs repeated.
    rep = jnp.repeat(jnp.eye(A, dtype=jnp.float32), E, axis=1)                      # (A, AE)

    w_s = jnp.concatenate(
        [p["w_hw1"], zS(AE), p["w_c1_s"], p["w_v1"], p["w_hwf"], p["w_hb1"], p["w_c2_s"]],
        axis=1).astype(jnp.bfloat16)                                                 # (S, N)
    w_q = jnp.concatenate(
        [zA(AE), rep, p["w_c1_q"], zA(E), zA(E), zA(E), zA(E)],
        axis=1).astype(jnp.bfloat16)                                                 # (A, N)
    b_fused = jnp.concatenate(
        [p["b_hw1"], jnp.zeros((1, AE), jnp.float32), p["b_c1"], p["b_v1"],
         p["b_hwf"], p["b_hb1"], p["b_c2"]], axis=1).astype(jnp.float32)             # (1, N)

    wc2x = p["w_c2_x"].astype(jnp.float32)                                           # (E, E)
    head_w = jnp.concatenate([p["w_v2"].T, p["w_cout"].T], axis=0).astype(jnp.float32)   # (2, E)
    head_b = jnp.concatenate([p["b_v2"], p["b_cout"]], axis=1).astype(jnp.float32)       # (1, 2)
    return w_s, w_q, b_fused, wc2x, head_w, head_b


def _cdiv(a, b):
    return -(-a // b)


def _round_up(x, m):
    return ((x + m - 1) // m) * m


# --------------------------------- wrapper --------------------------------------
@functools.partial(jax.jit, static_argnames=("tb",))
def relaxed_qmix_forward(agent_qs, states, params, *, tb=512):
    """agent_qs: (bs, T, n_agents), states: (bs, T, state_dim) -> (q_tot, q_corr), each (bs, T, 1)."""
    bs, T, A = agent_qs.shape
    S = states.shape[-1]
    E = EMBED_DIM
    B = bs * T

    w_s, w_q, b_fused, wc2x, head_w, head_b = _pack_params(params, A, S, E)

    # No concat / cast / pad in HBM: the two streams go straight into the kernel.
    s2d = states.reshape(B, S)
    q2d = agent_qs.reshape(B, A)

    # Tile sizing: aim for an even number of blocks (>= 2 per v7x TensorCore once
    # B > 2*tb) so both cores stay pipelined and balanced.  For tiny B a single block is
    # unavoidable.  `tb` is the per-block row cap (sweep to 1024-2048 on v6e for long B).
    n_half = max(1, _cdiv(B, 2 * tb))              # target blocks per TensorCore
    tb_eff = max(8, min(tb, _round_up(_cdiv(B, 2 * n_half), 8)))
    n_blocks = _cdiv(B, tb_eff)                    # even except when B <= tb_eff

    n_cols = int(w_s.shape[1])                     # 2*A*E + 5*E
    cost = pl.CostEstimate(
        flops=int(2 * B * (S + A) * n_cols + 2 * B * E * E + 16 * B * E),
        transcendentals=int(B * E),                # the ELU exp
        bytes_accessed=int(B * (S + A) * 4 + B * 2 * 4 + (S + A) * n_cols * 2
                           + n_cols * 4 + 3 * E * E * 4))

    kernel = functools.partial(_relaxed_qmix_kernel, n_agents=A, embed_dim=E, epsilon=EPSILON)
    full = lambda w: pl.BlockSpec(w.shape, lambda i: (0, 0))

    out = pl.pallas_call(
        kernel,
        out_shape=jax.ShapeDtypeStruct((B, 2), jnp.float32),
        grid_spec=pltpu.PrefetchScalarGridSpec(
            num_scalar_prefetch=0,
            grid=(n_blocks,),
            in_specs=[pl.BlockSpec((tb_eff, S), lambda i: (i, 0)),
                      pl.BlockSpec((tb_eff, A), lambda i: (i, 0)),
                      full(w_s), full(w_q), full(b_fused),
                      full(wc2x), full(head_w), full(head_b)],
            out_specs=pl.BlockSpec((tb_eff, 2), lambda i: (i, 0)),
        ),
        compiler_params=pltpu.CompilerParams(
            dimension_semantics=("parallel",),
            # ~1-3 MB live per block even at tb=2048; 32 MiB leaves headroom on v5e's
            # 16 MiB default scoped VMEM and stays within v7x's 64 MiB physical.
            vmem_limit_bytes=32 * 1024 * 1024),
        cost_estimate=cost,
    )(s2d, q2d, w_s, w_q, b_fused, wc2x, head_w, head_b)

    return out[:, 0:1].reshape(bs, T, 1), out[:, 1:2].reshape(bs, T, 1)


# --------------------------- deterministic param init ----------------------------
def init_params(key, n_agents=N_AGENTS, state_dim=STATE_DIM, embed_dim=EMBED_DIM):
    S, A, E = state_dim, n_agents, embed_dim
    keys = jax.random.split(key, 20)
    k = iter(keys)

    def lin(kk, fan_in, shape, scale=None):
        bound = scale if scale is not None else 1.0 / jnp.sqrt(fan_in)
        return jax.random.uniform(kk, shape, jnp.float32, -bound, bound)

    p = {}
    p["w_hw1"] = lin(next(k), S, (S, A * E))     # hyper_w_1
    p["b_hw1"] = lin(next(k), S, (1, A * E))
    p["w_hb1"] = lin(next(k), S, (S, E))         # hyper_b_1
    p["b_hb1"] = lin(next(k), S, (1, E))
    p["w_hwf"] = lin(next(k), S, (S, E))         # hyper_w_final
    p["b_hwf"] = lin(next(k), S, (1, E))
    p["w_v1"] = lin(next(k), S, (S, E))          # V[0]
    p["b_v1"] = lin(next(k), S, (1, E))
    p["w_v2"] = lin(next(k), E, (E, 1))          # V[2]
    p["b_v2"] = lin(next(k), E, (1, 1))
    # correction_fc1: Linear(A+S, E), xavier_uniform(gain=INIT_SCALE); concat order is [qs, s]
    xav1 = INIT_SCALE * jnp.sqrt(6.0 / ((A + S) + E))
    wc1 = jax.random.uniform(next(k), (A + S, E), jnp.float32, -xav1, xav1)
    p["w_c1_q"] = wc1[:A]
    p["w_c1_s"] = wc1[A:]
    p["b_c1"] = lin(next(k), A + S, (1, E))
    # correction_fc2: Linear(E+S, E), xavier_uniform(gain=INIT_SCALE); concat order is [x, s]
    xav2 = INIT_SCALE * jnp.sqrt(6.0 / ((E + S) + E))
    wc2 = jax.random.uniform(next(k), (E + S, E), jnp.float32, -xav2, xav2)
    p["w_c2_x"] = wc2[:E]
    p["w_c2_s"] = wc2[E:]
    p["b_c2"] = lin(next(k), E + S, (1, E))
    # correction_out: Linear(E, 1), xavier_uniform(gain=INIT_SCALE), bias = 0
    xav3 = INIT_SCALE * jnp.sqrt(6.0 / (E + 1))
    p["w_cout"] = jax.random.uniform(next(k), (E, 1), jnp.float32, -xav3, xav3)
    p["b_cout"] = jnp.zeros((1, 1), jnp.float32)
    return p


# ------------------------------- pure-JAX reference ------------------------------
def reference_forward(agent_qs, states, p):
    """Faithful port of the PyTorch forward (f32 math)."""
    bs, T, A = agent_qs.shape
    S = states.shape[-1]
    E = EMBED_DIM
    B = bs * T
    qs = agent_qs.reshape(B, A)
    s = states.reshape(B, S)
    w1 = jnp.abs(s @ p["w_hw1"] + p["b_hw1"]).reshape(B, A, E)
    b1 = (s @ p["w_hb1"] + p["b_hb1"]).reshape(B, 1, E)
    hidden = jax.nn.elu(jnp.einsum("ba,bae->be", qs, w1)[:, None, :] + b1)
    wf = jnp.abs(s @ p["w_hwf"] + p["b_hwf"]).reshape(B, E, 1)
    v = (jax.nn.relu(s @ p["w_v1"] + p["b_v1"]) @ p["w_v2"] + p["b_v2"]).reshape(B, 1, 1)
    y = jnp.einsum("bqe,bek->bqk", hidden, wf) + v
    x1 = jax.nn.relu(qs @ p["w_c1_q"] + s @ p["w_c1_s"] + p["b_c1"])
    x2 = jax.nn.relu(x1 @ p["w_c2_x"] + s @ p["w_c2_s"] + p["b_c2"])
    qc = (x2 @ p["w_cout"] + p["b_cout"]).reshape(bs, T, 1)
    q_tot = y.reshape(bs, T, 1) + EPSILON * qc
    return q_tot, qc

# TODO(synk): get_regularization_loss (training-time weight-norm regulariser) is not part
# of the forward pass and is not implemented as a kernel.


# ------------------------------------ main ----------------------------------------
if __name__ == "__main__":
    key = jax.random.PRNGKey(0)
    kp, kq, ks = jax.random.split(key, 3)

    bs, T = 2, 8
    params = init_params(kp)
    agent_qs = jax.random.normal(kq, (bs, T, N_AGENTS), jnp.float32)
    states = jax.random.normal(ks, (bs, T, STATE_DIM), jnp.float32)

    q_tot, q_corr = relaxed_qmix_forward(agent_qs, states, params)
    q_tot = jax.block_until_ready(q_tot)
    q_corr = jax.block_until_ready(q_corr)

    # Check against the faithful reference evaluated with the same bf16 rounding the
    # kernel applies to its streamed inputs / fused first-stage weights (all math and
    # accumulation stay f32 in both), so the comparison is tight and deterministic.
    rd = lambda a: a.astype(jnp.bfloat16).astype(jnp.float32)
    params_r = dict(params)
    for name in ("w_hw1", "w_hb1", "w_hwf", "w_v1", "w_c1_q", "w_c1_s", "w_c2_s"):
        params_r[name] = rd(params[name])
    with jax.default_matmul_precision("highest"):
        q_tot_ref, q_corr_ref = reference_forward(rd(agent_qs), rd(states), params_r)

    assert jnp.allclose(q_tot, q_tot_ref, atol=1e-3, rtol=1e-3)
    assert jnp.allclose(q_corr, q_corr_ref, atol=1e-3, rtol=1e-3)

    print("KERNEL_OK")
</pallas_src>

<mosaic_0001>
module attributes {stable_mosaic.version = 11 : i64} {
  func.func @_relaxed_qmix_kernel(%arg0: i32, %arg1: memref<8x32xf32, #tpu.memory_space<vmem>>, %arg2: memref<8x4xf32, #tpu.memory_space<vmem>>, %arg3: memref<32x416xbf16, #tpu.memory_space<vmem>>, %arg4: memref<4x416xbf16, #tpu.memory_space<vmem>>, %arg5: memref<1x416xf32, #tpu.memory_space<vmem>>, %arg6: memref<32x32xf32, #tpu.memory_space<vmem>>, %arg7: memref<2x32xf32, #tpu.memory_space<vmem>>, %arg8: memref<1x2xf32, #tpu.memory_space<vmem>>, %arg9: memref<8x2xf32, #tpu.memory_space<vmem>>) attributes {dimension_semantics = [#tpu.dimension_semantics<parallel>], iteration_bounds = array<i64: 2>, scalar_prefetch = 0 : i64, scratch_operands = 0 : i64, tpu.core_type = #tpu.core_type<tc>, window_params = [{transform_indices = @transform_0, window_bounds = array<i64: 8, 32>}, {transform_indices = @transform_1, window_bounds = array<i64: 8, 4>}, {pipeline_mode = #tpu.pipeline_mode<synchronous>, transform_indices = @transform_2, window_bounds = array<i64: 32, 416>}, {pipeline_mode = #tpu.pipeline_mode<synchronous>, transform_indices = @transform_3, window_bounds = array<i64: 4, 416>}, {pipeline_mode = #tpu.pipeline_mode<synchronous>, transform_indices = @transform_4, window_bounds = array<i64: 1, 416>}, {pipeline_mode = #tpu.pipeline_mode<synchronous>, transform_indices = @transform_5, window_bounds = array<i64: 32, 32>}, {pipeline_mode = #tpu.pipeline_mode<synchronous>, transform_indices = @transform_6, window_bounds = array<i64: 2, 32>}, {pipeline_mode = #tpu.pipeline_mode<synchronous>, transform_indices = @transform_7, window_bounds = array<i64: 1, 2>}, {transform_indices = @transform_8, window_bounds = array<i64: 8, 2>}]} {
    %c0 = arith.constant 0 : index
    %c0_0 = arith.constant 0 : index
    %0 = vector.load %arg1[%c0, %c0_0] : memref<8x32xf32, #tpu.memory_space<vmem>>, vector<8x32xf32>
    %1 = arith.truncf %0 : vector<8x32xf32> to vector<8x32xbf16>
    %c0_1 = arith.constant 0 : index
    %c0_2 = arith.constant 0 : index
    %2 = vector.load %arg2[%c0_1, %c0_2] : memref<8x4xf32, #tpu.memory_space<vmem>>, vector<8x4xf32>
    %3 = arith.truncf %2 : vector<8x4xf32> to vector<8x4xbf16>
    %c0_3 = arith.constant 0 : index
    %c0_4 = arith.constant 0 : index
    %4 = vector.load %arg3[%c0_3, %c0_4] : memref<32x416xbf16, #tpu.memory_space<vmem>>, vector<32x416xbf16>
    %cst = arith.constant dense<0.000000e+00> : vector<8x416xf32>
    %5 = tpu.matmul %1, %4, %cst {dimension_numbers = #tpu.dot_dimension_numbers<[1], [0], [0], [1], [0, 0, 1, 1], [], []>} : vector<8x32xbf16>, vector<32x416xbf16>, vector<8x416xf32> -> vector<8x416xf32>
    %c0_5 = arith.constant 0 : index
    %c0_6 = arith.constant 0 : index
    %6 = vector.load %arg4[%c0_5, %c0_6] : memref<4x416xbf16, #tpu.memory_space<vmem>>, vector<4x416xbf16>
    %cst_7 = arith.constant dense<0.000000e+00> : vector<8x416xf32>
    %7 = tpu.matmul %3, %6, %cst_7 {dimension_numbers = #tpu.dot_dimension_numbers<[1], [0], [0], [1], [0, 0, 1, 1], [], []>} : vector<8x4xbf16>, vector<4x416xbf16>, vector<8x416xf32> -> vector<8x416xf32>
    %8 = arith.addf %5, %7 : vector<8x416xf32>
    %c0_8 = arith.constant 0 : index
    %c0_9 = arith.constant 0 : index
    %9 = vector.load %arg5[%c0_8, %c0_9] : memref<1x416xf32, #tpu.memory_space<vmem>>, vector<1x416xf32>
    %10 = vector.broadcast %9 : vector<1x416xf32> to vector<8x416xf32>
    %11 = arith.addf %8, %10 : vector<8x416xf32>
    %12 = vector.extract_strided_slice %11 {offsets = [0, 0], sizes = [8, 128], strides = [1, 1]} : vector<8x416xf32> to vector<8x128xf32>
    %13 = math.absf %12 : vector<8x128xf32>
    %14 = vector.extract_strided_slice %11 {offsets = [0, 128], sizes = [8, 128], strides = [1, 1]} : vector<8x416xf32> to vector<8x128xf32>
    %15 = vector.extract_strided_slice %11 {offsets = [0, 256], sizes = [8, 96], strides = [1, 1]} : vector<8x416xf32> to vector<8x96xf32>
    %16 = tpu.iota {dimensions = array<i32: 1>} : vector<1x96xi32>
    %c64_i32 = arith.constant 64 : i32
    %17 = vector.broadcast %c64_i32 : i32 to vector<1x96xi32>
    %18 = arith.cmpi sge, %16, %17 : vector<1x96xi32>
    %cst_10 = arith.constant 0.000000e+00 : f32
    %19 = vector.broadcast %cst_10 : f32 to vector<8x96xf32>
    %20 = arith.subf %19, %15 : vector<8x96xf32>
    %cst_11 = arith.constant 0.000000e+00 : f32
    %21 = vector.shape_cast %18 : vector<1x96xi1> to vector<1x96xi1>
    %22 = vector.broadcast %21 : vector<1x96xi1> to vector<8x96xi1>
    %23 = vector.broadcast %cst_11 : f32 to vector<8x96xf32>
    %24 = arith.select %22, %20, %23 : vector<8x96xi1>, vector<8x96xf32>
    %25 = arith.maximumf %15, %24 : vector<8x96xf32>
    %26 = vector.extract_strided_slice %25 {offsets = [0, 0], sizes = [8, 32], strides = [1, 1]} : vector<8x96xf32> to vector<8x32xf32>
    %27 = vector.extract_strided_slice %25 {offsets = [0, 32], sizes = [8, 32], strides = [1, 1]} : vector<8x96xf32> to vector<8x32xf32>
    %28 = vector.extract_strided_slice %25 {offsets = [0, 64], sizes = [8, 32], strides = [1, 1]} : vector<8x96xf32> to vector<8x32xf32>
    %29 = vector.extract_strided_slice %11 {offsets = [0, 352], sizes = [8, 32], strides = [1, 1]} : vector<8x416xf32> to vector<8x32xf32>
    %30 = vector.extract_strided_slice %11 {offsets = [0, 384], sizes = [8, 32], strides = [1, 1]} : vector<8x416xf32> to vector<8x32xf32>
    %31 = arith.mulf %14, %13 : vector<8x128xf32>
    %c64_i32_12 = arith.constant 64 : i32
    %32 = tpu.dynamic_rotate %31 by %c64_i32_12 dim 1 : vector<8x128xf32>, i32 -> vector<8x128xf32>
    %33 = arith.addf %31, %32 : vector<8x128xf32>
    %c96_i32 = arith.constant 96 : i32
    %34 = tpu.dynamic_rotate %33 by %c96_i32 dim 1 : vector<8x128xf32>, i32 -> vector<8x128xf32>
    %35 = arith.addf %33, %34 : vector<8x128xf32>
    %36 = vector.extract_strided_slice %35 {offsets = [0, 0], sizes = [8, 32], strides = [1, 1]} : vector<8x128xf32> to vector<8x32xf32>
    %37 = arith.addf %36, %29 : vector<8x32xf32>
    %cst_13 = arith.constant 0.000000e+00 : f32
    %38 = vector.broadcast %cst_13 : f32 to vector<8x32xf32>
    %39 = arith.cmpf ogt, %37, %38 : vector<8x32xf32>
    %cst_14 = arith.constant 0.000000e+00 : f32
    %40 = vector.broadcast %cst_14 : f32 to vector<8x32xf32>
    %41 = arith.minimumf %37, %40 : vector<8x32xf32>
    %42 = math.exp %41 : vector<8x32xf32>
    %cst_15 = arith.constant 1.000000e+00 : f32
    %43 = vector.broadcast %cst_15 : f32 to vector<8x32xf32>
    %44 = arith.subf %42, %43 : vector<8x32xf32>
    %45 = arith.select %39, %37, %44 : vector<8x32xi1>, vector<8x32xf32>
    %c0_16 = arith.constant 0 : index
    %c0_17 = arith.constant 0 : index
    %46 = vector.load %arg7[%c0_16, %c0_17] : memref<2x32xf32, #tpu.memory_space<vmem>>, vector<2x32xf32>
    %c0_18 = arith.constant 0 : index
    %c0_19 = arith.constant 0 : index
    %47 = vector.load %arg8[%c0_18, %c0_19] : memref<1x2xf32, #tpu.memory_space<vmem>>, vector<1x2xf32>
    %48 = vector.extract_strided_slice %46 {offsets = [0, 0], sizes = [1, 32], strides = [1, 1]} : vector<2x32xf32> to vector<1x32xf32>
    %49 = vector.broadcast %48 : vector<1x32xf32> to vector<8x32xf32>
    %50 = arith.mulf %27, %49 : vector<8x32xf32>
    %cst_20 = arith.constant dense<0.000000e+00> : vector<8xf32>
    %51 = vector.multi_reduction <add>, %50, %cst_20 [1] : vector<8x32xf32> to vector<8xf32>
    %52 = vector.shape_cast %51 : vector<8xf32> to vector<8x1xf32>
    %53 = vector.extract_strided_slice %47 {offsets = [0, 0], sizes = [1, 1], strides = [1, 1]} : vector<1x2xf32> to vector<1x1xf32>
    %54 = vector.broadcast %53 : vector<1x1xf32> to vector<8x1xf32>
    %55 = arith.addf %52, %54 : vector<8x1xf32>
    %56 = arith.mulf %45, %28 : vector<8x32xf32>
    %cst_21 = arith.constant dense<0.000000e+00> : vector<8xf32>
    %57 = vector.multi_reduction <add>, %56, %cst_21 [1] : vector<8x32xf32> to vector<8xf32>
    %58 = vector.shape_cast %57 : vector<8xf32> to vector<8x1xf32>
    %59 = arith.addf %58, %55 : vector<8x1xf32>
    %c0_22 = arith.constant 0 : index
    %c0_23 = arith.constant 0 : index
    %60 = vector.load %arg6[%c0_22, %c0_23] : memref<32x32xf32, #tpu.memory_space<vmem>>, vector<32x32xf32>
    %cst_24 = arith.constant dense<0.000000e+00> : vector<8x32xf32>
    %61 = tpu.matmul %26, %60, %cst_24 {dimension_numbers = #tpu.dot_dimension_numbers<[1], [0], [0], [1], [0, 0, 1, 1], [], []>} : vector<8x32xf32>, vector<32x32xf32>, vector<8x32xf32> -> vector<8x32xf32>
    %62 = arith.addf %61, %30 : vector<8x32xf32>
    %cst_25 = arith.constant 0.000000e+00 : f32
    %63 = vector.broadcast %cst_25 : f32 to vector<8x32xf32>
    %64 = arith.maximumf %62, %63 : vector<8x32xf32>
    %65 = vector.extract_strided_slice %46 {offsets = [1, 0], sizes = [1, 32], strides = [1, 1]} : vector<2x32xf32> to vector<1x32xf32>
    %66 = vector.broadcast %65 : vector<1x32xf32> to vector<8x32xf32>
    %67 = arith.mulf %64, %66 : vector<8x32xf32>
    %cst_26 = arith.constant dense<0.000000e+00> : vector<8xf32>
    %68 = vector.multi_reduction <add>, %67, %cst_26 [1] : vector<8x32xf32> to vector<8xf32>
    %69 = vector.shape_cast %68 : vector<8xf32> to vector<8x1xf32>
    %70 = vector.extract_strided_slice %47 {offsets = [0, 1], sizes = [1, 1], strides = [1, 1]} : vector<1x2xf32> to vector<1x1xf32>
    %71 = vector.broadcast %70 : vector<1x1xf32> to vector<8x1xf32>
    %72 = arith.addf %69, %71 : vector<8x1xf32>
    %73 = tpu.iota {dimensions = array<i32: 1>} : vector<1x2xi32>
    %c0_i32 = arith.constant 0 : i32
    %74 = vector.broadcast %c0_i32 : i32 to vector<1x2xi32>
    %75 = arith.cmpi eq, %73, %74 : vector<1x2xi32>
    %cst_27 = arith.constant 1.000000e-01 : f32
    %76 = vector.broadcast %cst_27 : f32 to vector<8x1xf32>
    %77 = arith.mulf %76, %72 : vector<8x1xf32>
    %78 = arith.addf %59, %77 : vector<8x1xf32>
    %79 = vector.shape_cast %75 : vector<1x2xi1> to vector<1x2xi1>
    %80 = vector.broadcast %79 : vector<1x2xi1> to vector<8x2xi1>
    %81 = vector.shape_cast %78 : vector<8x1xf32> to vector<8x1xf32>
    %82 = vector.broadcast %81 : vector<8x1xf32> to vector<8x2xf32>
    %83 = vector.shape_cast %72 : vector<8x1xf32> to vector<8x1xf32>
    %84 = vector.broadcast %83 : vector<8x1xf32> to vector<8x2xf32>
    %85 = arith.select %80, %82, %84 : vector<8x2xi1>, vector<8x2xf32>
    %c0_28 = arith.constant 0 : index
    %c0_29 = arith.constant 0 : index
    %86 = vector.load %arg9[%c0_28, %c0_29] : memref<8x2xf32, #tpu.memory_space<vmem>>, vector<8x2xf32>
    tpu.vector_store %arg9[%c0_28, %c0_29], %85 {strides = array<i32>} : memref<8x2xf32, #tpu.memory_space<vmem>>, vector<8x2xf32>,
    return
  }
  func.func @transform_0(%arg0: i32) -> (i32, i32) {
    %c0_i32 = arith.constant 0 : i32
    %c0_i32_0 = arith.constant 0 : i32
    return %arg0, %c0_i32 : i32, i32
  }
  func.func @transform_1(%arg0: i32) -> (i32, i32) {
    %c0_i32 = arith.constant 0 : i32
    %c0_i32_0 = arith.constant 0 : i32
    return %arg0, %c0_i32 : i32, i32
  }
  func.func @transform_2(%arg0: i32) -> (i32, i32) {
    %c0_i32 = arith.constant 0 : i32
    %c0_i32_0 = arith.constant 0 : i32
    %c0_i32_1 = arith.constant 0 : i32
    return %c0_i32, %c0_i32_0 : i32, i32
  }
  func.func @transform_3(%arg0: i32) -> (i32, i32) {
    %c0_i32 = arith.constant 0 : i32
    %c0_i32_0 = arith.constant 0 : i32
    %c0_i32_1 = arith.constant 0 : i32
    return %c0_i32, %c0_i32_0 : i32, i32
  }
  func.func @transform_4(%arg0: i32) -> (i32, i32) {
    %c0_i32 = arith.constant 0 : i32
    %c0_i32_0 = arith.constant 0 : i32
    %c0_i32_1 = arith.constant 0 : i32
    return %c0_i32, %c0_i32_0 : i32, i32
  }
  func.func @transform_5(%arg0: i32) -> (i32, i32) {
    %c0_i32 = arith.constant 0 : i32
    %c0_i32_0 = arith.constant 0 : i32
    %c0_i32_1 = arith.constant 0 : i32
    return %c0_i32, %c0_i32_0 : i32, i32
  }
  func.func @transform_6(%arg0: i32) -> (i32, i32) {
    %c0_i32 = arith.constant 0 : i32
    %c0_i32_0 = arith.constant 0 : i32
    %c0_i32_1 = arith.constant 0 : i32
    return %c0_i32, %c0_i32_0 : i32, i32
  }
  func.func @transform_7(%arg0: i32) -> (i32, i32) {
    %c0_i32 = arith.constant 0 : i32
    %c0_i32_0 = arith.constant 0 : i32
    %c0_i32_1 = arith.constant 0 : i32
    return %c0_i32, %c0_i32_0 : i32, i32
  }
  func.func @transform_8(%arg0: i32) -> (i32, i32) {
    %c0_i32 = arith.constant 0 : i32
    %c0_i32_0 = arith.constant 0 : i32
    return %arg0, %c0_i32 : i32, i32
  }
}

</mosaic_0001>

<bundles_post_ra>
// kernel: relaxed_qmix_forward.1
= control target key start
LH: loop header
LB: loop body
LE: loop exit
PB: predicated region body
PF: predicated region fallthrough
CT: control target
= control target key end

     0   :  { %s983_s27 = smov 0   ;;  %s1075_s0 = inlined_call_operand.vmem [shape: f32[16,32], index: 0, kind: input, shape index: {}]   ;;  %s1076_s1 = inlined_call_operand.vmem [shape: f32[16,4], index: 1, kind: input, shape index: {}]   ;;  %s1077_s2 = inlined_call_operand.vmem [shape: bf16[32,416], index: 2, kind: input, shape index: {}]   ;;  %s1078_s3 = inlined_call_operand.vmem [shape: bf16[4,416], index: 3, kind: input, shape index: {}]   ;;  %s1079_s4 = inlined_call_operand.vmem [shape: f32[1,416], index: 4, kind: input, shape index: {}]   ;;  %s1080_s5 = inlined_call_operand.vmem [shape: f32[32,32], index: 5, kind: input, shape index: {}]   ;;  %s1081_s6 = inlined_call_operand.vmem [shape: f32[2,32], index: 6, kind: input, shape index: {}]   ;;  %s1082_s7 = inlined_call_operand.vmem [shape: f32[1,2], index: 7, kind: input, shape index: {}]   ;;  %s1083_s8 = inlined_call_operand.vmem [shape: f32[16,2], index: 8, kind: output, shape index: {}]  }
   0x1 LB: > { %s835_s28 = sadd.s32 4294967295, %s926_s27   ;;  %p839_p0 = scmp.ge.s32.totalorder %s926_s27, 1  ;;  %s926_s27 = sphi %s983_s27, %s18_s27  }
   0x2   : > { %p270_p1 = scmp.lt.s32.totalorder %s926_s27, 3 }
   0x4   : > { %p271_p2 = pnand %p839_p0, %p270_p1 }
   0x5   : > { %v331_v0 = vld [vmem:[%s1078_s3] sm:$0xff] (!%p271_p2)  ;;  %v337_v1 = vlaneseq (!%p271_p2)  ;;  %p306_p3 = scmp.lt.s32.totalorder (!%p271_p2), %s835_s28, 1  ;;  %v928_v2 = vmov (!%p271_p2), 1983009808   ;;  %v929_v4 = vmov (!%p271_p2), 0   ;;  %vm354_vm0 = vcmask (!%p271_p2), 1041408  }
   0x6   : > { %274 = sbr.rel (%p271_p2) target bundleno = 866 (0x362), region = 52  ;;  %v335_v3 = vunpack.c.l.s4 (!%p271_p2), %v928_v2  ;;  %399 = vmatprep.mubr.bf16.mxu0 (!%p271_p2), %v929_v4  ;;  %440 = vmatprep.mubr.bf16.mxu1 (!%p271_p2), %v929_v4  ;;  %v333_v7 = vcombine.high (!%p271_p2), %v331_v0, %v331_v0  ;;  %v908_v16 = vld [vmem:[%s1077_s2 + $0x4] ss:$16 sps:$4 sm:$0xff] (!%p271_p2)   ;;  %v911_v17 = vld [vmem:[%s1077_s2 + $0xc] ss:$16 sps:$4 sm:$0xff] (!%p271_p2)   ;;  %vm350_vm1 = vcmask (!%p271_p2), 31744  }
   0x7   : > { %v995_v5 = vshrl.u32 (!%p271_p2), %v337_v1, 7  ;;  %902 = vset.pattern.permute.xlu1 (!%p271_p2), %v929_v4  ;;  %v906_v19 = vld [vmem:[%s1077_s2] ss:$16 sps:$4 sm:$0xff] (!%p271_p2)   ;;  %v909_v20 = vld [vmem:[%s1077_s2 + $0x8] ss:$16 sps:$4 sm:$0xff] (!%p271_p2)   ;;  %vm489_vm2 = vcmask (!%p271_p2), 261120  }
   0x8   : > { %v336_v6 = vunpack.c.0.s8 (!%p271_p2), %v335_v3  ;;  %v914_v21 = vld [vmem:[%s1077_s2 + $0x24] ss:$16 sps:$4 sm:$0xff] (!%p271_p2)   ;;  %v917_v22 = vld [vmem:[%s1077_s2 + $0x2c] ss:$16 sps:$4 sm:$0xff] (!%p271_p2)   ;;  %v912_v23 = vld [vmem:[%s1077_s2 + $0x20] ss:$16 sps:$4 sm:$0xff] (!%p271_p2)  }
   0x9   : > { %v915_v24 = vld [vmem:[%s1077_s2 + $0x28] ss:$16 sps:$4 sm:$0xff] (!%p271_p2)   ;;  %v662_v27 = vld [vmem:[%s1080_s5] sm:$0xff] (!%p271_p2)  ;;  %v930_v29 = vmov (!%p271_p2), 0.0|0.0   ;;  %v664_v31 = vld [vmem:[%s1080_s5 + $0x10] sm:$0xff] (!%p271_p2)  ;;  %vm931_vm3 = vmmov (!%p271_p2), 0  }
   0xa   : > { %v339_v8 = vsub.s32 (!%p271_p2), %v336_v6, %v995_v5  ;;  %v663_v28 = vld [vmem:[%s1080_s5 + $0x8] sm:$0xff] (!%p271_p2)  ;;  %v665_v32 = vld [vmem:[%s1080_s5 + $0x18] sm:$0xff] (!%p271_p2)  ;;  %v932_v34 = vmov (!%p271_p2), 0.0   ;;  %v579_v43 = vsub.s32 (!%p271_p2), 0, %v995_v5  ;;  %v587_v44 = vsub.s32 (!%p271_p2), 2, %v995_v5  ;;  %s933_s24 = smov (!%p271_p2), 64  }
   0xb   : > { %v879_v30 = vpack.c.bf16 (!%p271_p2), %v663_v28, %v662_v27  ;;  %v882_v33 = vpack.c.bf16 (!%p271_p2), %v665_v32, %v664_v31  ;;  %v575_v45 = vld [vmem:[%s1079_s4] sm:$0xf] (!%p271_p2)  ;;  %v583_v46 = vsub.s32 (!%p271_p2), 1, %v995_v5  ;;  %v591_v47 = vsub.s32 (!%p271_p2), 3, %v995_v5  ;;  %s934_s25 = smov (!%p271_p2), 32   ;;  %s935_s26 = smov (!%p271_p2), 96  }
   0xc   : > { %v340_v9 = vrot.slane (!%p271_p2), %v331_v0, %v339_v8  ;;  %v347_v10 = vrot.slane (!%p271_p2), %v333_v7, %v339_v8  ;;  %v580_v48 = vrot.slane (!%p271_p2), %v575_v45, %v579_v43  ;;  %v588_v49 = vrot.slane (!%p271_p2), %v575_v45, %v587_v44  ;;  %v628_v7 = vld [vmem:[%s1081_s6] sm:$0x3] (!%p271_p2)  ;;  %s937_s30 = smov (!%p271_p2), 127  }
   0xd   : > { %s1085_s28 = smov (!%p306_p3, %s835_s28), 1  ;;  %v1054_v52 = vand.u32 127, %v337_v1  ;;  %v584_v53 = vrot.slane %v575_v45, %v583_v46  ;;  %v592_v54 = vrot.slane %v575_v45, %v591_v47  ;;  %vm768_vm7 = vcmask 15360  }
   0xe   : > { %s997_s9 = sshll.u32 %s1085_s28, 3  ;;  %v348_v12 = vcombine.high %v340_v9, %v340_v9  ;;  %v349_v13 = vcombine.high %v347_v10, %v347_v10  ;;  %v356_v14 = vsel %vm354_vm0, %v340_v9, 0  ;;  %v362_v15 = vsel %vm354_vm0, %v347_v10, 0 }
   0xf   : > { %s313_s12 = scalar_lea.vmem %s1076_s1, %s997_s9  ;;  %s309_s28 = scalar_lea.vmem %s1075_s0, %s997_s9  ;;  %vm604_vm4 = vcmp.ge.s32.totalorder %v1054_v52, 64  ;;  %vm748_vm6 = vcmp.eq.s32.totalorder %v1054_v52, 0 }
  0x10   : > { %v321_v11 = vld [vmem:[%s313_s12] sm:$0xff]  ;;  %843 = vmatprep.subr.msk.bf16.mxu0 %vm354_vm0, %v348_v12  ;;  %845 = vmatprep.subr.msk.bf16.mxu1 %vm354_vm0, %v349_v13  ;;  %s317_s12 = scalar_lea.vmem %s1083_s8, %s997_s9 }
  0x11   : > { %v322_v18 = vpack.c.bf16 %v321_v11, %v321_v11  ;;  %368 = vmatpush1.bf16.msra.mxu0 %v356_v14  ;;  %409 = vmatpush1.bf16.msra.mxu1 %v362_v15  ;;  %v319_v25 = vld [vmem:[%s309_s28] sm:$0xff]  ;;  %v633_v11 = vrot.slane %v628_v7, %v579_v43 }
  0x12   : > { %493 = vmatprep.subr.bf16.mxu0 %v908_v16  ;;  %534 = vmatprep.subr.bf16.mxu1 %v911_v17  ;;  %v320_v26 = vpack.c.bf16 %v319_v25, %v319_v25 }
  0x14   : > { %844 = vmatmul.mubr.msk.bf16.vlgmr.msra.gmra.mrb[0].mxu0 %vm350_vm1, %v322_v18  ;;  %846 = vmatmul.mubr.msk.bf16.vlgmr.msra.gmra.mrb[0].mxu1 %vm350_vm1, %v322_v18 }
  0x15   : > { %494 = vmatpush1.bf16.msra.mxu0 %v906_v19  ;;  %535 = vmatpush1.bf16.msra.mxu1 %v909_v20  ;;  %v742_v19 = vrot.slane %v628_v7, %v583_v46 }
  0x16   : > { %495 = vmatprep.subr.bf16.mxu0 %v914_v21  ;;  %536 = vmatprep.subr.bf16.mxu1 %v917_v22 }
  0x17   : > { %525 = vmatprep.mubr.bf16.mxu0 %v929_v4  ;;  %566 = vmatprep.mubr.bf16.mxu1 %v929_v4 }
  0x19   : > { %496 = vmatpush1.bf16.msra.mxu0 %v912_v23  ;;  %537 = vmatpush1.bf16.msra.mxu1 %v915_v24 }
  0x1a   : > { %878 = vmatprep.subr.bf16.mxu0 %v930_v29 }
  0x1c   : > { %855 = vmatmul.mubr.msk.bf16.vlgmr.msra.gmra.mrb[4].mxu0 %vm489_vm2, %v320_v26  ;;  %856 = vmatmul.mubr.msk.bf16.vlgmr.msra.gmra.mrb[4].mxu1 %vm489_vm2, %v320_v26 }
  0x1d   : > { %880 = vmatpush3.bf16.msra.mxu0 %v879_v30  ;;  %875 = vmatprep.mubr.msk.f32.mxu0 %vm931_vm3, %v932_v34 }
  0x1e   : > { %881 = vmatprep.subr.bf16.mxu0 %v930_v29 }
  0x21   : > { %883 = vmatpush3.bf16.msra.mxu0 %v882_v33 }
  0xe7   : > { %v442_v35 = vpop.f32.mrb[0].mxu1  ;;  %v401_v36 = vpop.f32.mrb[0].mxu0 }
  0xe8   : > { %v444_v37 = vpop.f32.mrb[1].mxu1  ;;  %v403_v38 = vpop.f32.mrb[1].mxu0 }
  0xe9   : > { %v446_v39 = vpop.f32.mrb[2].mxu1  ;;  %v405_v40 = vpop.f32.mrb[2].mxu0 }
  0xea   : > { %v447_v41 = vpop.f32.mrb[3].mxu1  ;;  %v406_v42 = vpop.f32.mrb[3].mxu0 }
  0xef   : > { %v527_v50 = vpop.f32.mrb[4].mxu0  ;;  %v568_v51 = vpop.f32.mrb[4].mxu1 }
  0xf0   : > { %v528_v55 = vadd.f32 %v527_v50, %v401_v36  ;;  %v569_v56 = vadd.f32 %v568_v51, %v442_v35  ;;  %v570_v57 = vpop.f32.mrb[5].mxu1  ;;  %v529_v58 = vpop.f32.mrb[5].mxu0 }
  0xf1   : > { %v571_v59 = vadd.f32 %v570_v57, %v444_v37  ;;  %v530_v60 = vadd.f32 %v529_v58, %v403_v38  ;;  %v572_v61 = vpop.f32.mrb[6].mxu1  ;;  %v531_v62 = vpop.f32.mrb[6].mxu0  ;;  %v936_v37 = vmov 1   ;;  %v858_v38 = vld [vmem:[%s1082_s7] ss:$0 sm:$0xff] }
  0xf2   : > { %v597_v63 = vadd.f32 %v580_v48, %v528_v55  ;;  %v599_v0 = vadd.f32 %v588_v49, %v569_v56  ;;  %v573_v2 = vpop.f32.mrb[7].mxu1  ;;  %v532_v3 = vpop.f32.mrb[7].mxu0  ;;  %904 = vset.pattern.permute.xlu0 %v936_v37 }
  0xf3   : > { %v598_v4 = vadd.f32 %v584_v53, %v530_v60  ;;  %v600_v5 = vadd.f32 %v592_v54, %v571_v59 }
  0xf4   : > { %v601_v1 = vand.u32 2147483647, %v597_v63  ;;  %v605_v6 = vsub.f32 0.0, %v599_v0 }
  0xf6   : > { %v608_v8 = vsel %vm604_vm4, %v605_v6, 0.0  ;;  %v610_v9 = vmul.f32 %v601_v1, %v598_v4 }
  0xf7   : > { %v609_v10 = vmax.f32 %v599_v0, %v608_v8 }
  0xf8   : > { %611 = vrot.lane.b32.xlu0 %v610_v9, %s933_s24 }
  0xf9   : > { %876 = vmatmul.mubr.msk.f32.vlgmr.msra.gmra.mrb[8].mxu0 %vm489_vm2, %v609_v10 }
  0xfc   : > { %635 = vrot.lane.b32.xlu0 %v633_v11, %s934_s25 }
 0x16a   : > { %v612_v12 = vpop.permute.xlu0 %611 }
 0x16b   : > { %v613_v13 = vadd.f32 %v612_v12, %v610_v9 }
 0x16d   : > { %614 = vrot.lane.b32.xlu1 %v613_v13, %s935_s26 }
 0x16e   : > { %v636_v14 = vpop.permute.xlu0 %635 }
 0x16f   : > { %v638_v15 = vmul.f32 %v636_v14, %v609_v10 }
 0x171   : > { %618 = vrot.lane.b32.xlu1 %v599_v0, %s934_s25  ;;  %640 = vrot.lane.b32.xlu0 %v638_v15, %s935_s26 }
 0x175   : > { %654 = vrot.lane.b32.xlu1 %v609_v10, %s933_s24 }
 0x1cc   : > { %v734_v16 = vpop.f32.mrb[8].mxu0 }
 0x1cd   : > { %v735_v17 = vadd.f32 %v734_v16, %v600_v5  ;;  %v877_v18 = vpop.f32.mrb[9].mxu0 }
 0x1cf   : > { %v738_v20 = vmax.f32 %v735_v17, 0.0 }
 0x1d1   : > { %v743_v21 = vmul.f32 %v742_v19, %v738_v20 }
 0x1d3   : > { %v744_v22 = vsel %vm489_vm2, %v743_v21, 0.0 }
 0x1d4   : > { %745 = vadd.xlane.f32.xlu0 %v744_v22 }
 0x1df   : > { %v615_v23 = vpop.permute.xlu1 %614 }
 0x1e0   : > { %v616_v24 = vadd.f32 %v615_v23, %v613_v13 }
 0x1e3   : > { %v619_v25 = vpop.permute.xlu1 %618  ;;  %v641_v26 = vpop.permute.xlu0 %640 }
 0x1e4   : > { %v621_v27 = vadd.f32 %v619_v25, %v616_v24  ;;  %v643_v28 = vsel %vm489_vm2, %v641_v26, 0.0 }
 0x1e5   : > { %644 = vadd.xlane.f32.xlu1 %v643_v28 }
 0x1e6   : > { %v623_v29 = vmin.f32 %v621_v27, 0.0  ;;  %vm622_vm5 = vcmp.gt.f32.partialorder %v621_v27, 0.0 }
 0x1e7   : > { %v655_v34 = vpop.permute.xlu1 %654 }
 0x1e8   : > { %v624_v30 = vmul.f32 1.442695, %v623_v29 }
 0x1ea   : > { %918 = vpow2.f32 %v624_v30 }
 0x1f4   : > { %v919_v31 = vpop.eup %918 }
 0x1f5   : > { %v857_v32 = vadd.f32 -1.0, %v919_v31 }
 0x1f7   : > { %v627_v33 = vsel %vm622_vm5, %v621_v27, %v857_v32 }
 0x1f8   : > { %v657_v35 = vmul.f32 %v655_v34, %v627_v33 }
 0x1fa   : > { %v658_v36 = vsel %vm489_vm2, %v657_v35, 0.0 }
 0x1fb   : > { %659 = vadd.xlane.f32.xlu0 %v658_v36 }
 0x261   : > { %v746_v39 = vpop.xlane.xlu0 %745 }
 0x262   : > { %v747_v40 = vadd.f32 %v858_v38, %v746_v39 }
 0x264   : > { %v749_v41 = vmul.f32 0.1, %v747_v40 }
 0x266   : > { %751 = vrot.lane.b32.xlu0 %v749_v41, %s937_s30 }
 0x272   : > { %v645_v42 = vpop.xlane.xlu1 %644 }
 0x273   : > { %v652_v44 = vadd.f32 %v858_v38, %v645_v42 }
 0x288   : > { %v660_v43 = vpop.xlane.xlu0 %659 }
 0x289   : > { %v661_v45 = vadd.f32 %v660_v43, %v652_v44 }
 0x2d8   : > { %v752_v46 = vpop.permute.xlu0 %751 }
 0x2d9   : > { %v754_v47 = vadd.f32 %v752_v46, %v661_v45 }
 0x2db   : > { %759 = vperm.xlu1 %902, %v754_v47  }
 0x2df   : > { %903 = vset.pattern.permute.xlu1 %v936_v37 }
 0x2e0   : > { %764 = vperm.xlu1 %903, %v747_v40  }
 0x35a   : > { %v760_v48 = vpop.permute.xlu1 %759 }
 0x35f   : > { %v765_v49 = vpop.permute.xlu1 %764 }
 0x360   : > { %v767_v50 = vsel %vm748_vm6, %v760_v48, %v765_v49 }
 0x361   : > { %769 = vst.msk [vmem:[%s317_s12] sm:$0xff] %vm768_vm7, %v767_v50 }
 0x362 PF: > { %s18_s27 = sadd.s32 1, %s926_s27  }
 0x363   : > { %p15_p4 = scmp.ge.s32.totalorder %s18_s27, 4  }
 0x365   :  { %17 = sbr.rel (!%p15_p4) target bundleno = 1 (0x1), region = 85 }

</bundles_post_ra>
